<compile_context>
chip_gen: v7x
topology: tpu7x:2x2x1
jax: 0.10.0
libtpu: 0.0.40
codegen_flags: <defaults>
</compile_context>

<pallas_src>
import jax
import jax.numpy as jnp
from jax.experimental import pallas as pl
from jax.experimental.pallas import tpu as pltpu

_LANE = 128
_NEG_SLOPE = 0.2  # LeakyReLU(0.2) from the PyTorch module


# ----------------------------------------------------------------------------
# helpers
# ----------------------------------------------------------------------------
def _round_up(x, m):
    return (x + m - 1) // m * m


def _min_sublanes(dtype):
    """Dtype-aware minimal sublane tile (8 f32 / 16 bf16 / 32 int8-fp8)."""
    itemsize = jnp.dtype(dtype).itemsize
    if itemsize >= 4:
        return 8
    if itemsize == 2:
        return 16
    return 32


def _pad_to(a, shape):
    """Zero-pad a 2D array up to `shape` (no-op when already that shape)."""
    pads = [(0, t - s) for s, t in zip(a.shape, shape)]
    return jnp.pad(a, pads)


def _leaky_relu(h):
    # max(h, 0.2*h) == LeakyReLU(0.2) for slope < 1.  Pure VPU work.
    return jnp.maximum(h, _NEG_SLOPE * h)


def _linear(h, w_ref, b_ref):
    # (tile_b, K) @ (K, N) on the MXU, f32 accumulate, + sublane-broadcast bias
    return jnp.dot(h, w_ref[...], preferred_element_type=jnp.float32) + b_ref[...]


# ----------------------------------------------------------------------------
# kernels
# ----------------------------------------------------------------------------
def _encoder_kernel(x_ref, eps_ref,
                    w1, b1, w2, b2, w3, b3, w4, b4, wmu, bmu, wlv, blv,
                    mu_ref, lv_ref, z_ref):
    """Fused encoder: 4x (Linear + LeakyReLU) -> mu/logvar heads -> reparam."""
    h = x_ref[...].astype(jnp.float32)
    for w, b in ((w1, b1), (w2, b2), (w3, b3), (w4, b4)):
        h = _leaky_relu(_linear(h, w, b))
    mu = _linear(h, wmu, bmu)
    lv = _linear(h, wlv, blv)
    # reparametrize: z = mu + exp(logvar / 2) * eps   (EUP exp, VPU fma)
    z = mu + jnp.exp(lv * 0.5) * eps_ref[...].astype(jnp.float32)
    mu_ref[...] = mu.astype(mu_ref.dtype)
    lv_ref[...] = lv.astype(lv_ref.dtype)
    z_ref[...] = z.astype(z_ref.dtype)


def _decoder_kernel(x_ref,
                    w1, b1, w2, b2, w3, b3, w4, b4, w5, b5,
                    out_ref):
    """Fused decoder: 4x (Linear + LeakyReLU) -> final Linear."""
    h = x_ref[...].astype(jnp.float32)
    for w, b in ((w1, b1), (w2, b2), (w3, b3), (w4, b4)):
        h = _leaky_relu(_linear(h, w, b))
    out_ref[...] = _linear(h, w5, b5).astype(out_ref.dtype)


# ----------------------------------------------------------------------------
# pallas_call wrapper shared by encoder / decoder
# ----------------------------------------------------------------------------
def _mlp_call(kernel, row_args, param_pairs, out_widths, tile_b, out_dtype):
    """Run `kernel` tiled over the batch (row) axis.

    row_args     : list of (n_pad, feat) arrays tiled by rows (x, eps, ...)
    param_pairs  : list of (W_pad, b_pad) kept fully resident per grid step
    out_widths   : tuple of output lane widths (each a multiple of 128)
    """
    n_pad = row_args[0].shape[0]
    grid = (n_pad // tile_b,)

    in_specs = [pl.BlockSpec((tile_b, a.shape[1]), lambda i: (i, 0)) for a in row_args]
    flat_params = []
    for w, b in param_pairs:
        in_specs.append(pl.BlockSpec(w.shape, lambda i: (0, 0)))
        in_specs.append(pl.BlockSpec(b.shape, lambda i: (0, 0)))
        flat_params += [w, b]

    multi = len(out_widths) > 1
    out_specs = tuple(pl.BlockSpec((tile_b, c), lambda i: (i, 0)) for c in out_widths)
    out_shape = tuple(jax.ShapeDtypeStruct((n_pad, c), out_dtype) for c in out_widths)
    if not multi:
        out_specs, out_shape = out_specs[0], out_shape[0]

    return pl.pallas_call(
        kernel,
        out_shape=out_shape,
        grid_spec=pltpu.PrefetchScalarGridSpec(
            num_scalar_prefetch=0,
            grid=grid,
            in_specs=in_specs,
            out_specs=out_specs,
        ),
        compiler_params=pltpu.CompilerParams(
            dimension_semantics=("parallel",),     # megacore sharding on v7x
            vmem_limit_bytes=32 * 1024 * 1024,     # safe on v5e/v6e/v7x
        ),
    )(*row_args, *flat_params)


# ----------------------------------------------------------------------------
# model
# ----------------------------------------------------------------------------
class BetaVAEMLPPallas:
    """JAX/Pallas mirror of the PyTorch BetaVAE_MLP forward pass."""

    def __init__(self, input_dim=3, z_dim=10, hidden_dim=128, lag=2, *, key):
        self.input_dim = input_dim
        self.z_dim = z_dim
        self.hidden_dim = hidden_dim
        self.lag = lag
        dec_in = (1 + lag) * z_dim

        keys = jax.random.split(key, 10)
        enc_dims = [(input_dim, hidden_dim)] + [(hidden_dim, hidden_dim)] * 3 + \
                   [(hidden_dim, 2 * z_dim)]
        dec_dims = [(dec_in, hidden_dim)] + [(hidden_dim, hidden_dim)] * 3 + \
                   [(hidden_dim, input_dim)]
        # unpadded params (kaiming_normal weights / zero bias, as in kaiming_init)
        self.enc_raw = [self._init_linear(k, i, o) for k, (i, o) in zip(keys[:5], enc_dims)]
        self.dec_raw = [self._init_linear(k, i, o) for k, (i, o) in zip(keys[5:], dec_dims)]

        # MXU-friendly padded params
        self.d_in_p = _round_up(input_dim, _LANE)
        self.h_p = _round_up(hidden_dim, _LANE)
        self.zp = _round_up(z_dim, _LANE)
        self.dec_in_p = _round_up(dec_in, _LANE)
        self.out_p = _round_up(input_dim, _LANE)

        enc_pad_dims = [(self.d_in_p, self.h_p)] + [(self.h_p, self.h_p)] * 3
        self.enc_params = [
            (_pad_to(w, d), _pad_to(b.reshape(1, -1), (1, d[1])))
            for (w, b), d in zip(self.enc_raw[:4], enc_pad_dims)
        ]
        # split the last encoder layer into mu / logvar heads (exactly equivalent
        # to distributions[:, :z_dim] / [:, z_dim:], keeps lanes aligned in-kernel)
        w5, b5 = self.enc_raw[4]
        self.enc_params.append((_pad_to(w5[:, :z_dim], (self.h_p, self.zp)),
                                _pad_to(b5[:z_dim].reshape(1, -1), (1, self.zp))))
        self.enc_params.append((_pad_to(w5[:, z_dim:], (self.h_p, self.zp)),
                                _pad_to(b5[z_dim:].reshape(1, -1), (1, self.zp))))

        dec_pad_dims = [(self.dec_in_p, self.h_p)] + [(self.h_p, self.h_p)] * 3 + \
                       [(self.h_p, self.out_p)]
        self.dec_params = [
            (_pad_to(w, d), _pad_to(b.reshape(1, -1), (1, d[1])))
            for (w, b), d in zip(self.dec_raw, dec_pad_dims)
        ]

    @staticmethod
    def _init_linear(key, fan_in, fan_out):
        std = (2.0 / fan_in) ** 0.5  # kaiming_normal (fan_in, ReLU gain)
        w = std * jax.random.normal(key, (fan_in, fan_out), dtype=jnp.float32)
        b = jnp.zeros((fan_out,), dtype=jnp.float32)
        return w, b

    def forward(self, x, xt, eps, return_z=True):
        """x: (N, input_dim) with N = B*(lag+1); xt: (B, lag, z_dim); eps: (N, z_dim)."""
        n = x.shape[0]
        lagp1 = self.lag + 1
        assert n % lagp1 == 0
        batch = n // lagp1
        sub = _min_sublanes(x.dtype)

        # ---- fused encoder (+ mu/logvar heads + reparametrization) ----
        tile_enc = min(_round_up(n, sub), 512)
        n_pad = _round_up(n, tile_enc)
        x_pad = _pad_to(x, (n_pad, self.d_in_p))
        eps_pad = _pad_to(eps, (n_pad, self.zp))
        mu_p, lv_p, z_p = _mlp_call(
            _encoder_kernel, [x_pad, eps_pad], self.enc_params,
            (self.zp, self.zp, self.zp), tile_enc, x.dtype)
        mu = mu_p[:n, :self.z_dim]
        logvar = lv_p[:n, :self.z_dim]
        z = z_p[:n, :self.z_dim].reshape(batch, lagp1, self.z_dim)

        # ---- tiny glue: z.view + slice + cat + view (metadata-level, ~KB) ----
        # TODO(synk): this slice/concat stays in JAX; folding it into the decoder
        # BlockSpec index_map is not worth a gather for these sizes.
        zt_ = z[:, -1:, :]
        cat = jnp.concatenate([zt_, xt], axis=1).reshape(batch, lagp1 * self.z_dim)

        # ---- fused decoder ----
        tile_dec = min(_round_up(batch, sub), 512)
        b_pad = _round_up(batch, tile_dec)
        cat_pad = _pad_to(cat, (b_pad, self.dec_in_p))
        rec_p = _mlp_call(
            _decoder_kernel, [cat_pad], self.dec_params,
            (self.out_p,), tile_dec, x.dtype)
        x_recon = rec_p[:batch, :self.input_dim]

        if return_z:
            return x_recon, mu, logvar, z
        return x_recon, mu, logvar


# ----------------------------------------------------------------------------
# pure-JAX reference (mirrors the PyTorch forward exactly)
# ----------------------------------------------------------------------------
def _reference_forward(model, x, xt, eps):
    def mlp(params, h):
        for i, (w, b) in enumerate(params):
            h = h @ w + b
            if i < len(params) - 1:
                h = jnp.where(h > 0, h, _NEG_SLOPE * h)
        return h

    dist = mlp(model.enc_raw, x)
    mu = dist[:, :model.z_dim]
    logvar = dist[:, model.z_dim:]
    z = mu + jnp.exp(logvar / 2.0) * eps
    z = z.reshape(-1, model.lag + 1, model.z_dim)
    cat = jnp.concatenate([z[:, -1:, :], xt], axis=1)
    cat = cat.reshape(-1, (model.lag + 1) * model.z_dim)
    x_recon = mlp(model.dec_raw, cat)
    return x_recon, mu, logvar, z


if __name__ == "__main__":
    key = jax.random.PRNGKey(0)
    k_model, k_x, k_xt, k_eps = jax.random.split(key, 4)

    input_dim, z_dim, hidden_dim, lag = 3, 10, 128, 2
    batch = 8
    n = batch * (lag + 1)

    model = BetaVAEMLPPallas(input_dim, z_dim, hidden_dim, lag, key=k_model)
    x = jax.random.normal(k_x, (n, input_dim), dtype=jnp.float32)
    xt = jax.random.normal(k_xt, (batch, lag, z_dim), dtype=jnp.float32)
    # eps plays the role of torch's std.data.new(...).normal_() (fixed for the test)
    eps = jax.random.normal(k_eps, (n, z_dim), dtype=jnp.float32)

    x_recon, mu, logvar, z = model.forward(x, xt, eps)
    x_recon, mu, logvar, z = jax.block_until_ready((x_recon, mu, logvar, z))

    assert x_recon.shape == (batch, input_dim), x_recon.shape
    assert mu.shape == (n, z_dim) and logvar.shape == (n, z_dim)
    assert z.shape == (batch, lag + 1, z_dim), z.shape
    assert x_recon.dtype == jnp.float32

    r_rec, r_mu, r_lv, r_z = _reference_forward(model, x, xt, eps)
    assert jnp.allclose(mu, r_mu, atol=5e-2, rtol=5e-2)
    assert jnp.allclose(logvar, r_lv, atol=5e-2, rtol=5e-2)
    assert jnp.allclose(z, r_z, atol=5e-2, rtol=5e-2)
    assert jnp.allclose(x_recon, r_rec, atol=5e-2, rtol=5e-2)

    print("KERNEL_OK")
</pallas_src>

<mosaic_0001>
module attributes {stable_mosaic.version = 11 : i64} {
  func.func @_encoder_kernel(%arg0: i32, %arg1: memref<24x128xf32, #tpu.memory_space<vmem>>, %arg2: memref<24x128xf32, #tpu.memory_space<vmem>>, %arg3: memref<128x128xf32, #tpu.memory_space<vmem>>, %arg4: memref<1x128xf32, #tpu.memory_space<vmem>>, %arg5: memref<128x128xf32, #tpu.memory_space<vmem>>, %arg6: memref<1x128xf32, #tpu.memory_space<vmem>>, %arg7: memref<128x128xf32, #tpu.memory_space<vmem>>, %arg8: memref<1x128xf32, #tpu.memory_space<vmem>>, %arg9: memref<128x128xf32, #tpu.memory_space<vmem>>, %arg10: memref<1x128xf32, #tpu.memory_space<vmem>>, %arg11: memref<128x128xf32, #tpu.memory_space<vmem>>, %arg12: memref<1x128xf32, #tpu.memory_space<vmem>>, %arg13: memref<128x128xf32, #tpu.memory_space<vmem>>, %arg14: memref<1x128xf32, #tpu.memory_space<vmem>>, %arg15: memref<24x128xf32, #tpu.memory_space<vmem>>, %arg16: memref<24x128xf32, #tpu.memory_space<vmem>>, %arg17: memref<24x128xf32, #tpu.memory_space<vmem>>) attributes {dimension_semantics = [#tpu.dimension_semantics<parallel>], iteration_bounds = array<i64: 1>, scalar_prefetch = 0 : i64, scratch_operands = 0 : i64, tpu.core_type = #tpu.core_type<tc>, window_params = [{transform_indices = @transform_0, window_bounds = array<i64: 24, 128>}, {transform_indices = @transform_1, window_bounds = array<i64: 24, 128>}, {pipeline_mode = #tpu.pipeline_mode<synchronous>, transform_indices = @transform_2, window_bounds = array<i64: 128, 128>}, {pipeline_mode = #tpu.pipeline_mode<synchronous>, transform_indices = @transform_3, window_bounds = array<i64: 1, 128>}, {pipeline_mode = #tpu.pipeline_mode<synchronous>, transform_indices = @transform_4, window_bounds = array<i64: 128, 128>}, {pipeline_mode = #tpu.pipeline_mode<synchronous>, transform_indices = @transform_5, window_bounds = array<i64: 1, 128>}, {pipeline_mode = #tpu.pipeline_mode<synchronous>, transform_indices = @transform_6, window_bounds = array<i64: 128, 128>}, {pipeline_mode = #tpu.pipeline_mode<synchronous>, transform_indices = @transform_7, window_bounds = array<i64: 1, 128>}, {pipeline_mode = #tpu.pipeline_mode<synchronous>, transform_indices = @transform_8, window_bounds = array<i64: 128, 128>}, {pipeline_mode = #tpu.pipeline_mode<synchronous>, transform_indices = @transform_9, window_bounds = array<i64: 1, 128>}, {pipeline_mode = #tpu.pipeline_mode<synchronous>, transform_indices = @transform_10, window_bounds = array<i64: 128, 128>}, {pipeline_mode = #tpu.pipeline_mode<synchronous>, transform_indices = @transform_11, window_bounds = array<i64: 1, 128>}, {pipeline_mode = #tpu.pipeline_mode<synchronous>, transform_indices = @transform_12, window_bounds = array<i64: 128, 128>}, {pipeline_mode = #tpu.pipeline_mode<synchronous>, transform_indices = @transform_13, window_bounds = array<i64: 1, 128>}, {transform_indices = @transform_14, window_bounds = array<i64: 24, 128>}, {transform_indices = @transform_15, window_bounds = array<i64: 24, 128>}, {transform_indices = @transform_16, window_bounds = array<i64: 24, 128>}]} {
    %c0 = arith.constant 0 : index
    %c0_0 = arith.constant 0 : index
    %0 = vector.load %arg1[%c0, %c0_0] : memref<24x128xf32, #tpu.memory_space<vmem>>, vector<24x128xf32>
    %c0_1 = arith.constant 0 : index
    %c0_2 = arith.constant 0 : index
    %1 = vector.load %arg3[%c0_1, %c0_2] : memref<128x128xf32, #tpu.memory_space<vmem>>, vector<128x128xf32>
    %cst = arith.constant dense<0.000000e+00> : vector<24x128xf32>
    %2 = tpu.matmul %0, %1, %cst {dimension_numbers = #tpu.dot_dimension_numbers<[1], [0], [0], [1], [0, 0, 1, 1], [], []>} : vector<24x128xf32>, vector<128x128xf32>, vector<24x128xf32> -> vector<24x128xf32>
    %c0_3 = arith.constant 0 : index
    %c0_4 = arith.constant 0 : index
    %3 = vector.load %arg4[%c0_3, %c0_4] : memref<1x128xf32, #tpu.memory_space<vmem>>, vector<1x128xf32>
    %4 = vector.broadcast %3 : vector<1x128xf32> to vector<24x128xf32>
    %5 = arith.addf %2, %4 : vector<24x128xf32>
    %cst_5 = arith.constant 2.000000e-01 : f32
    %6 = vector.broadcast %cst_5 : f32 to vector<24x128xf32>
    %7 = arith.mulf %6, %5 : vector<24x128xf32>
    %8 = arith.maximumf %5, %7 : vector<24x128xf32>
    %c0_6 = arith.constant 0 : index
    %c0_7 = arith.constant 0 : index
    %9 = vector.load %arg5[%c0_6, %c0_7] : memref<128x128xf32, #tpu.memory_space<vmem>>, vector<128x128xf32>
    %cst_8 = arith.constant dense<0.000000e+00> : vector<24x128xf32>
    %10 = tpu.matmul %8, %9, %cst_8 {dimension_numbers = #tpu.dot_dimension_numbers<[1], [0], [0], [1], [0, 0, 1, 1], [], []>} : vector<24x128xf32>, vector<128x128xf32>, vector<24x128xf32> -> vector<24x128xf32>
    %c0_9 = arith.constant 0 : index
    %c0_10 = arith.constant 0 : index
    %11 = vector.load %arg6[%c0_9, %c0_10] : memref<1x128xf32, #tpu.memory_space<vmem>>, vector<1x128xf32>
    %12 = vector.broadcast %11 : vector<1x128xf32> to vector<24x128xf32>
    %13 = arith.addf %10, %12 : vector<24x128xf32>
    %cst_11 = arith.constant 2.000000e-01 : f32
    %14 = vector.broadcast %cst_11 : f32 to vector<24x128xf32>
    %15 = arith.mulf %14, %13 : vector<24x128xf32>
    %16 = arith.maximumf %13, %15 : vector<24x128xf32>
    %c0_12 = arith.constant 0 : index
    %c0_13 = arith.constant 0 : index
    %17 = vector.load %arg7[%c0_12, %c0_13] : memref<128x128xf32, #tpu.memory_space<vmem>>, vector<128x128xf32>
    %cst_14 = arith.constant dense<0.000000e+00> : vector<24x128xf32>
    %18 = tpu.matmul %16, %17, %cst_14 {dimension_numbers = #tpu.dot_dimension_numbers<[1], [0], [0], [1], [0, 0, 1, 1], [], []>} : vector<24x128xf32>, vector<128x128xf32>, vector<24x128xf32> -> vector<24x128xf32>
    %c0_15 = arith.constant 0 : index
    %c0_16 = arith.constant 0 : index
    %19 = vector.load %arg8[%c0_15, %c0_16] : memref<1x128xf32, #tpu.memory_space<vmem>>, vector<1x128xf32>
    %20 = vector.broadcast %19 : vector<1x128xf32> to vector<24x128xf32>
    %21 = arith.addf %18, %20 : vector<24x128xf32>
    %cst_17 = arith.constant 2.000000e-01 : f32
    %22 = vector.broadcast %cst_17 : f32 to vector<24x128xf32>
    %23 = arith.mulf %22, %21 : vector<24x128xf32>
    %24 = arith.maximumf %21, %23 : vector<24x128xf32>
    %c0_18 = arith.constant 0 : index
    %c0_19 = arith.constant 0 : index
    %25 = vector.load %arg9[%c0_18, %c0_19] : memref<128x128xf32, #tpu.memory_space<vmem>>, vector<128x128xf32>
    %cst_20 = arith.constant dense<0.000000e+00> : vector<24x128xf32>
    %26 = tpu.matmul %24, %25, %cst_20 {dimension_numbers = #tpu.dot_dimension_numbers<[1], [0], [0], [1], [0, 0, 1, 1], [], []>} : vector<24x128xf32>, vector<128x128xf32>, vector<24x128xf32> -> vector<24x128xf32>
    %c0_21 = arith.constant 0 : index
    %c0_22 = arith.constant 0 : index
    %27 = vector.load %arg10[%c0_21, %c0_22] : memref<1x128xf32, #tpu.memory_space<vmem>>, vector<1x128xf32>
    %28 = vector.broadcast %27 : vector<1x128xf32> to vector<24x128xf32>
    %29 = arith.addf %26, %28 : vector<24x128xf32>
    %cst_23 = arith.constant 2.000000e-01 : f32
    %30 = vector.broadcast %cst_23 : f32 to vector<24x128xf32>
    %31 = arith.mulf %30, %29 : vector<24x128xf32>
    %32 = arith.maximumf %29, %31 : vector<24x128xf32>
    %c0_24 = arith.constant 0 : index
    %c0_25 = arith.constant 0 : index
    %33 = vector.load %arg11[%c0_24, %c0_25] : memref<128x128xf32, #tpu.memory_space<vmem>>, vector<128x128xf32>
    %cst_26 = arith.constant dense<0.000000e+00> : vector<24x128xf32>
    %34 = tpu.matmul %32, %33, %cst_26 {dimension_numbers = #tpu.dot_dimension_numbers<[1], [0], [0], [1], [0, 0, 1, 1], [], []>} : vector<24x128xf32>, vector<128x128xf32>, vector<24x128xf32> -> vector<24x128xf32>
    %c0_27 = arith.constant 0 : index
    %c0_28 = arith.constant 0 : index
    %35 = vector.load %arg12[%c0_27, %c0_28] : memref<1x128xf32, #tpu.memory_space<vmem>>, vector<1x128xf32>
    %36 = vector.broadcast %35 : vector<1x128xf32> to vector<24x128xf32>
    %37 = arith.addf %34, %36 : vector<24x128xf32>
    %c0_29 = arith.constant 0 : index
    %c0_30 = arith.constant 0 : index
    %38 = vector.load %arg13[%c0_29, %c0_30] : memref<128x128xf32, #tpu.memory_space<vmem>>, vector<128x128xf32>
    %cst_31 = arith.constant dense<0.000000e+00> : vector<24x128xf32>
    %39 = tpu.matmul %32, %38, %cst_31 {dimension_numbers = #tpu.dot_dimension_numbers<[1], [0], [0], [1], [0, 0, 1, 1], [], []>} : vector<24x128xf32>, vector<128x128xf32>, vector<24x128xf32> -> vector<24x128xf32>
    %c0_32 = arith.constant 0 : index
    %c0_33 = arith.constant 0 : index
    %40 = vector.load %arg14[%c0_32, %c0_33] : memref<1x128xf32, #tpu.memory_space<vmem>>, vector<1x128xf32>
    %41 = vector.broadcast %40 : vector<1x128xf32> to vector<24x128xf32>
    %42 = arith.addf %39, %41 : vector<24x128xf32>
    %cst_34 = arith.constant 5.000000e-01 : f32
    %43 = vector.broadcast %cst_34 : f32 to vector<24x128xf32>
    %44 = arith.mulf %42, %43 : vector<24x128xf32>
    %45 = math.exp %44 : vector<24x128xf32>
    %c0_35 = arith.constant 0 : index
    %c0_36 = arith.constant 0 : index
    %46 = vector.load %arg2[%c0_35, %c0_36] : memref<24x128xf32, #tpu.memory_space<vmem>>, vector<24x128xf32>
    %47 = arith.mulf %45, %46 : vector<24x128xf32>
    %48 = arith.addf %37, %47 : vector<24x128xf32>
    %c0_37 = arith.constant 0 : index
    %c0_38 = arith.constant 0 : index
    %49 = vector.load %arg15[%c0_37, %c0_38] : memref<24x128xf32, #tpu.memory_space<vmem>>, vector<24x128xf32>
    tpu.vector_store %arg15[%c0_37, %c0_38], %37 {strides = array<i32>} : memref<24x128xf32, #tpu.memory_space<vmem>>, vector<24x128xf32>,
    %c0_39 = arith.constant 0 : index
    %c0_40 = arith.constant 0 : index
    %50 = vector.load %arg16[%c0_39, %c0_40] : memref<24x128xf32, #tpu.memory_space<vmem>>, vector<24x128xf32>
    tpu.vector_store %arg16[%c0_39, %c0_40], %42 {strides = array<i32>} : memref<24x128xf32, #tpu.memory_space<vmem>>, vector<24x128xf32>,
    %c0_41 = arith.constant 0 : index
    %c0_42 = arith.constant 0 : index
    %51 = vector.load %arg17[%c0_41, %c0_42] : memref<24x128xf32, #tpu.memory_space<vmem>>, vector<24x128xf32>
    tpu.vector_store %arg17[%c0_41, %c0_42], %48 {strides = array<i32>} : memref<24x128xf32, #tpu.memory_space<vmem>>, vector<24x128xf32>,
    return
  }
  func.func @transform_0(%arg0: i32) -> (i32, i32) {
    %c0_i32 = arith.constant 0 : i32
    %c0_i32_0 = arith.constant 0 : i32
    return %arg0, %c0_i32 : i32, i32
  }
  func.func @transform_1(%arg0: i32) -> (i32, i32) {
    %c0_i32 = arith.constant 0 : i32
    %c0_i32_0 = arith.constant 0 : i32
    return %arg0, %c0_i32 : i32, i32
  }
  func.func @transform_2(%arg0: i32) -> (i32, i32) {
    %c0_i32 = arith.constant 0 : i32
    %c0_i32_0 = arith.constant 0 : i32
    %c0_i32_1 = arith.constant 0 : i32
    return %c0_i32, %c0_i32_0 : i32, i32
  }
  func.func @transform_3(%arg0: i32) -> (i32, i32) {
    %c0_i32 = arith.constant 0 : i32
    %c0_i32_0 = arith.constant 0 : i32
    %c0_i32_1 = arith.constant 0 : i32
    return %c0_i32, %c0_i32_0 : i32, i32
  }
  func.func @transform_4(%arg0: i32) -> (i32, i32) {
    %c0_i32 = arith.constant 0 : i32
    %c0_i32_0 = arith.constant 0 : i32
    %c0_i32_1 = arith.constant 0 : i32
    return %c0_i32, %c0_i32_0 : i32, i32
  }
  func.func @transform_5(%arg0: i32) -> (i32, i32) {
    %c0_i32 = arith.constant 0 : i32
    %c0_i32_0 = arith.constant 0 : i32
    %c0_i32_1 = arith.constant 0 : i32
    return %c0_i32, %c0_i32_0 : i32, i32
  }
  func.func @transform_6(%arg0: i32) -> (i32, i32) {
    %c0_i32 = arith.constant 0 : i32
    %c0_i32_0 = arith.constant 0 : i32
    %c0_i32_1 = arith.constant 0 : i32
    return %c0_i32, %c0_i32_0 : i32, i32
  }
  func.func @transform_7(%arg0: i32) -> (i32, i32) {
    %c0_i32 = arith.constant 0 : i32
    %c0_i32_0 = arith.constant 0 : i32
    %c0_i32_1 = arith.constant 0 : i32
    return %c0_i32, %c0_i32_0 : i32, i32
  }
  func.func @transform_8(%arg0: i32) -> (i32, i32) {
    %c0_i32 = arith.constant 0 : i32
    %c0_i32_0 = arith.constant 0 : i32
    %c0_i32_1 = arith.constant 0 : i32
    return %c0_i32, %c0_i32_0 : i32, i32
  }
  func.func @transform_9(%arg0: i32) -> (i32, i32) {
    %c0_i32 = arith.constant 0 : i32
    %c0_i32_0 = arith.constant 0 : i32
    %c0_i32_1 = arith.constant 0 : i32
    return %c0_i32, %c0_i32_0 : i32, i32
  }
  func.func @transform_10(%arg0: i32) -> (i32, i32) {
    %c0_i32 = arith.constant 0 : i32
    %c0_i32_0 = arith.constant 0 : i32
    %c0_i32_1 = arith.constant 0 : i32
    return %c0_i32, %c0_i32_0 : i32, i32
  }
  func.func @transform_11(%arg0: i32) -> (i32, i32) {
    %c0_i32 = arith.constant 0 : i32
    %c0_i32_0 = arith.constant 0 : i32
    %c0_i32_1 = arith.constant 0 : i32
    return %c0_i32, %c0_i32_0 : i32, i32
  }
  func.func @transform_12(%arg0: i32) -> (i32, i32) {
    %c0_i32 = arith.constant 0 : i32
    %c0_i32_0 = arith.constant 0 : i32
    %c0_i32_1 = arith.constant 0 : i32
    return %c0_i32, %c0_i32_0 : i32, i32
  }
  func.func @transform_13(%arg0: i32) -> (i32, i32) {
    %c0_i32 = arith.constant 0 : i32
    %c0_i32_0 = arith.constant 0 : i32
    %c0_i32_1 = arith.constant 0 : i32
    return %c0_i32, %c0_i32_0 : i32, i32
  }
  func.func @transform_14(%arg0: i32) -> (i32, i32) {
    %c0_i32 = arith.constant 0 : i32
    %c0_i32_0 = arith.constant 0 : i32
    return %arg0, %c0_i32 : i32, i32
  }
  func.func @transform_15(%arg0: i32) -> (i32, i32) {
    %c0_i32 = arith.constant 0 : i32
    %c0_i32_0 = arith.constant 0 : i32
    return %arg0, %c0_i32 : i32, i32
  }
  func.func @transform_16(%arg0: i32) -> (i32, i32) {
    %c0_i32 = arith.constant 0 : i32
    %c0_i32_0 = arith.constant 0 : i32
    return %arg0, %c0_i32 : i32, i32
  }
}

</mosaic_0001>

<bundles_post_ra>
// kernel: tpu_custom_call.1
= control target key start
LH: loop header
LB: loop body
LE: loop exit
PB: predicated region body
PF: predicated region fallthrough
CT: control target
= control target key end

     0   :  { %s2080_s0 = inlined_call_operand.hbm [shape: f32[24,128], index: 0, kind: input, shape index: {}]   ;;  %s2081_s1 = inlined_call_operand.hbm [shape: f32[24,128], index: 1, kind: input, shape index: {}]   ;;  %s2082_s2 = inlined_call_operand.hbm [shape: f32[128,128], index: 2, kind: input, shape index: {}]   ;;  %s2083_s3 = inlined_call_operand.vmem [shape: f32[1,128], index: 3, kind: input, shape index: {}]   ;;  %s2084_s4 = inlined_call_operand.hbm [shape: f32[128,128], index: 4, kind: input, shape index: {}]   ;;  %s2085_s5 = inlined_call_operand.vmem [shape: f32[1,128], index: 5, kind: input, shape index: {}]   ;;  %s2086_s6 = inlined_call_operand.hbm [shape: f32[128,128], index: 6, kind: input, shape index: {}]   ;;  %s2087_s7 = inlined_call_operand.vmem [shape: f32[1,128], index: 7, kind: input, shape index: {}]   ;;  %s2088_s8 = inlined_call_operand.hbm [shape: f32[128,128], index: 8, kind: input, shape index: {}]   ;;  %s2089_s9 = inlined_call_operand.vmem [shape: f32[1,128], index: 9, kind: input, shape index: {}]   ;;  %s2090_s10 = inlined_call_operand.hbm [shape: f32[128,128], index: 10, kind: input, shape index: {}]   ;;  %s2091_s11 = inlined_call_operand.vmem [shape: f32[1,128], index: 11, kind: input, shape index: {}]   ;;  %s2092_s12 = inlined_call_operand.hbm [shape: f32[128,128], index: 12, kind: input, shape index: {}]   ;;  %s2093_s13 = inlined_call_operand.vmem [shape: f32[1,128], index: 13, kind: input, shape index: {}]   ;;  %s2094_s14 = inlined_call_operand.hbm [shape: f32[24,128], index: 14, kind: output, shape index: {0}]   ;;  %s2095_s15 = inlined_call_operand.hbm [shape: f32[24,128], index: 15, kind: output, shape index: {1}]   ;;  %s2096_s16 = inlined_call_operand.hbm [shape: f32[24,128], index: 16, kind: output, shape index: {2}]  }
   0x1   :  { %2098 = sst [smem:[#allocation27_spill]] %s2080_s0 }
   0x2   :  { %22 = vsyncpa [#allocation3], 0 }
   0x3   :  { %23 = vsyncpa [#allocation6], 0 }
   0x4   :  { %24 = vsyncpa [#allocation9], 0 }
   0x5   :  { %25 = vsyncpa [#allocation12], 0 }
   0x6   :  { %26 = vsyncpa [#allocation15], 0 }
   0x7   :  { %27 = vsyncpa [#allocation4], 0 }
   0x8   :  { %28 = vsyncpa [#allocation18], 0  ;;  %s1673_s21 = smov [#allocation5]   ;;  %s1674_s23 = smov [#allocation8]  }
   0x9   :  { %s46_s22 = sshll.u32 %s1673_s21, 4  ;;  %s72_s24 = sshll.u32 %s1674_s23, 4  ;;  %s47_s22 = int_to_ptr.vmem [resolvable:$true] %s46_s22  ;;  %s1774_s24 = int_to_ptr.vmem [resolvable:$true] %s72_s24 }
   0xa   :  { %s1417_s27 = scalar_lea.hbm %s2081_s1, 384 }
   0xb   :  { %p1418_p0 = scmp.ne.s32.totalorder %s2081_s1, %s1417_s27  ;;  %p1421_p1 = scmp.lt.u32.totalorder %s1417_s27, %s2081_s1 }
   0xd   :  { %p1423_p2 = pnand %p1421_p1, %p1418_p0 }
   0xf   :  { %1426 = shalt.err (!%p1423_p2)
}
  0x10   :  { %s1427_s17 = scalar_lea.vmem %s47_s22, 384  ;;  %p1432_p4 = scmp.lt.s32.totalorder %s47_s22, %s47_s22 }
  0x11   :  { %p1428_p3 = scmp.ne.s32.totalorder %s47_s22, %s1427_s17  ;;  %p1433_p5 = scmp.lt.s32.totalorder %s1427_s17, %s1427_s17 }
  0x13   :  { %p1434_p6 = por %p1433_p5, %p1432_p4 }
  0x15   :  { %p1435_p7 = pnand %p1434_p6, %p1428_p3 }
  0x17   :  { %1438 = shalt.err (!%p1435_p7)
}
  0x18   :  { %s1675_s18 = smov 128   ;;  %s1676_s19 = smov 8  }
  0x19   :  { %52 = dma.hbm_to_vmem [thread:$0]  %s2081_s1, 384, %s47_s22, [#allocation6], %s1675_s18, %s1675_s18, %s1676_s19  }
  0x1a   :  { %s1439_s26 = scalar_lea.hbm %s2084_s4, 2048 }
  0x1b   :  { %p1440_p8 = scmp.ne.s32.totalorder %s2084_s4, %s1439_s26  ;;  %p1443_p9 = scmp.lt.u32.totalorder %s1439_s26, %s2084_s4 }
  0x1d   :  { %p1445_p10 = pnand %p1443_p9, %p1440_p8 }
  0x1f   :  { %1448 = shalt.err (!%p1445_p10)
}
  0x20   :  { %s1449_s0 = scalar_lea.vmem %s1774_s24, 2048  ;;  %p1454_p12 = scmp.lt.s32.totalorder %s1774_s24, %s1774_s24 }
  0x21   :  { %p1450_p11 = scmp.ne.s32.totalorder %s1774_s24, %s1449_s0  ;;  %p1455_p13 = scmp.lt.s32.totalorder %s1449_s0, %s1449_s0 }
  0x23   :  { %p1456_p0 = por %p1455_p13, %p1454_p12 }
  0x25   :  { %p1457_p1 = pnand %p1456_p0, %p1450_p11 }
  0x27   :  { %1460 = shalt.err (!%p1457_p1)
}
  0x28   :  { %78 = dma.hbm_to_vmem [thread:$0]  %s2084_s4, 2048, %s1774_s24, [#allocation9], %s1675_s18, %s1675_s18, %s1676_s19  }
  0x29   :  { %s1677_s17 = smov [#allocation11]   ;;  %s1678_s21 = smov [#allocation2]  }
  0x2a   :  { %s100_s20 = sshll.u32 %s1677_s17, 4  ;;  %s34_s23 = sshll.u32 %s1678_s21, 4  ;;  %s101_s20 = int_to_ptr.vmem [resolvable:$true] %s100_s20  ;;  %s1811_s23 = int_to_ptr.vmem [resolvable:$true] %s34_s23 }
  0x2b   :  { %s1461_s27 = scalar_lea.hbm %s2088_s8, 2048 }
  0x2c   :  { %p1462_p2 = scmp.ne.s32.totalorder %s2088_s8, %s1461_s27  ;;  %p1465_p3 = scmp.lt.u32.totalorder %s1461_s27, %s2088_s8 }
  0x2e   :  { %p1467_p4 = pnand %p1465_p3, %p1462_p2 }
  0x30   :  { %1470 = shalt.err (!%p1467_p4)
}
  0x31   :  { %s1471_s4 = scalar_lea.vmem %s101_s20, 2048  ;;  %p1476_p6 = scmp.lt.s32.totalorder %s101_s20, %s101_s20 }
  0x32   :  { %p1472_p5 = scmp.ne.s32.totalorder %s101_s20, %s1471_s4  ;;  %p1477_p7 = scmp.lt.s32.totalorder %s1471_s4, %s1471_s4 }
  0x34   :  { %p1478_p8 = por %p1477_p7, %p1476_p6 }
  0x36   :  { %p1479_p9 = pnand %p1478_p8, %p1472_p5 }
  0x38   :  { %1482 = shalt.err (!%p1479_p9)
}
  0x39   :  { %106 = dma.hbm_to_vmem [thread:$0]  %s2088_s8, 2048, %s101_s20, [#allocation12], %s1675_s18, %s1675_s18, %s1676_s19  }
  0x3a   :  { %s2099_s21 = sld [smem:[#allocation27_spill]] }
  0x40   :  { %s1483_s25 = scalar_lea.hbm %s2099_s21, 384 }
  0x41   :  { %p1484_p10 = scmp.ne.s32.totalorder %s2099_s21, %s1483_s25  ;;  %p1487_p11 = scmp.lt.u32.totalorder %s1483_s25, %s2099_s21 }
  0x43   :  { %p1489_p12 = pnand %p1487_p11, %p1484_p10 }
  0x45   :  { %1492 = shalt.err (!%p1489_p12)
}
  0x46   :  { %s1493_s30 = scalar_lea.vmem %s1811_s23, 384  ;;  %p1498_p0 = scmp.lt.s32.totalorder %s1811_s23, %s1811_s23 }
  0x47   :  { %p1494_p13 = scmp.ne.s32.totalorder %s1811_s23, %s1493_s30  ;;  %p1499_p1 = scmp.lt.s32.totalorder %s1493_s30, %s1493_s30 }
  0x49   :  { %p1500_p2 = por %p1499_p1, %p1498_p0 }
  0x4b   :  { %p1501_p3 = pnand %p1500_p2, %p1494_p13 }
  0x4d   :  { %1504 = shalt.err (!%p1501_p3)
}
  0x4e   :  { %40 = dma.hbm_to_vmem [thread:$0]  %s2099_s21, 384, %s1811_s23, [#allocation3], %s1675_s18, %s1675_s18, %s1676_s19  }
  0x4f   :  { %s1679_s0 = smov [#allocation7]   ;;  %s1680_s24 = smov [#allocation10]  }
  0x50   :  { %s58_s4 = sshll.u32 %s1679_s0, 4  ;;  %s86_s1 = sshll.u32 %s1680_s24, 4  ;;  %s59_s4 = int_to_ptr.vmem [resolvable:$true] %s58_s4  ;;  %s1848_s1 = int_to_ptr.vmem [resolvable:$true] %s86_s1 }
  0x51   :  { %s1505_s25 = scalar_lea.hbm %s2082_s2, 2048 }
  0x52   :  { %p1506_p4 = scmp.ne.s32.totalorder %s2082_s2, %s1505_s25  ;;  %p1509_p5 = scmp.lt.u32.totalorder %s1505_s25, %s2082_s2 }
  0x54   :  { %p1511_p6 = pnand %p1509_p5, %p1506_p4 }
  0x56   :  { %1514 = shalt.err (!%p1511_p6)
}
  0x57   :  { %s1515_s23 = scalar_lea.vmem %s59_s4, 2048  ;;  %p1520_p8 = scmp.lt.s32.totalorder %s59_s4, %s59_s4 }
  0x58   :  { %p1516_p7 = scmp.ne.s32.totalorder %s59_s4, %s1515_s23  ;;  %p1521_p9 = scmp.lt.s32.totalorder %s1515_s23, %s1515_s23 }
  0x5a   :  { %p1522_p10 = por %p1521_p9, %p1520_p8 }
  0x5c   :  { %p1523_p11 = pnand %p1522_p10, %p1516_p7 }
  0x5e   :  { %1526 = shalt.err (!%p1523_p11)
}
  0x5f   :  { %64 = dma.hbm_to_vmem [thread:$0]  %s2082_s2, 2048, %s59_s4, [#allocation6], %s1675_s18, %s1675_s18, %s1676_s19  }
  0x60   :  { %s1527_s0 = scalar_lea.hbm %s2086_s6, 2048 }
  0x61   :  { %p1528_p12 = scmp.ne.s32.totalorder %s2086_s6, %s1527_s0  ;;  %p1531_p13 = scmp.lt.u32.totalorder %s1527_s0, %s2086_s6 }
  0x63   :  { %p1533_p0 = pnand %p1531_p13, %p1528_p12 }
  0x65   :  { %1536 = shalt.err (!%p1533_p0)
}
  0x66   :  { %s1537_s26 = scalar_lea.vmem %s1848_s1, 2048  ;;  %p1542_p2 = scmp.lt.s32.totalorder %s1848_s1, %s1848_s1 }
  0x67   :  { %p1538_p1 = scmp.ne.s32.totalorder %s1848_s1, %s1537_s26  ;;  %p1543_p3 = scmp.lt.s32.totalorder %s1537_s26, %s1537_s26 }
  0x69   :  { %p1544_p4 = por %p1543_p3, %p1542_p2 }
  0x6b   :  { %p1545_p5 = pnand %p1544_p4, %p1538_p1 }
  0x6d   :  { %1548 = shalt.err (!%p1545_p5)
}
  0x6e   :  { %92 = dma.hbm_to_vmem [thread:$0]  %s2086_s6, 2048, %s1848_s1, [#allocation9], %s1675_s18, %s1675_s18, %s1676_s19  }
  0x6f   :  { %s1681_s27 = smov [#allocation13]   ;;  %s1682_s29 = smov [#allocation14]  }
  0x70   :  { %s114_s28 = sshll.u32 %s1681_s27, 4  ;;  %s128_s23 = sshll.u32 %s1682_s29, 4  ;;  %s115_s28 = int_to_ptr.vmem [resolvable:$true] %s114_s28  ;;  %s1885_s23 = int_to_ptr.vmem [resolvable:$true] %s128_s23 }
  0x71   :  { %s1549_s8 = scalar_lea.hbm %s2090_s10, 2048 }
  0x72   :  { %p1550_p6 = scmp.ne.s32.totalorder %s2090_s10, %s1549_s8  ;;  %p1553_p7 = scmp.lt.u32.totalorder %s1549_s8, %s2090_s10 }
  0x74   :  { %p1555_p8 = pnand %p1553_p7, %p1550_p6 }
  0x76   :  { %1558 = shalt.err (!%p1555_p8)
}
  0x77   :  { %s1559_s6 = scalar_lea.vmem %s115_s28, 2048  ;;  %p1564_p10 = scmp.lt.s32.totalorder %s115_s28, %s115_s28 }
  0x78   :  { %p1560_p9 = scmp.ne.s32.totalorder %s115_s28, %s1559_s6  ;;  %p1565_p11 = scmp.lt.s32.totalorder %s1559_s6, %s1559_s6 }
  0x7a   :  { %p1566_p12 = por %p1565_p11, %p1564_p10 }
  0x7c   :  { %p1567_p13 = pnand %p1566_p12, %p1560_p9 }
  0x7e   :  { %1570 = shalt.err (!%p1567_p13)
}
  0x7f   :  { %120 = dma.hbm_to_vmem [thread:$0]  %s2090_s10, 2048, %s115_s28, [#allocation12], %s1675_s18, %s1675_s18, %s1676_s19  }
  0x80   :  { %s1571_s2 = scalar_lea.hbm %s2092_s12, 2048 }
  0x81   :  { %p1572_p0 = scmp.ne.s32.totalorder %s2092_s12, %s1571_s2  ;;  %p1575_p1 = scmp.lt.u32.totalorder %s1571_s2, %s2092_s12 }
  0x83   :  { %p1577_p2 = pnand %p1575_p1, %p1572_p0 }
  0x85   :  { %1580 = shalt.err (!%p1577_p2)
}
  0x86   :  { %s1581_s30 = scalar_lea.vmem %s1885_s23, 2048  ;;  %p1586_p4 = scmp.lt.s32.totalorder %s1885_s23, %s1885_s23 }
  0x87   :  { %p1582_p3 = scmp.ne.s32.totalorder %s1885_s23, %s1581_s30  ;;  %p1587_p5 = scmp.lt.s32.totalorder %s1581_s30, %s1581_s30 }
  0x89   :  { %p1588_p6 = por %p1587_p5, %p1586_p4 }
  0x8b   :  { %p1589_p7 = pnand %p1588_p6, %p1582_p3 }
  0x8d   :  { %1592 = shalt.err (!%p1589_p7)
}
  0x8e   :  { %134 = dma.hbm_to_vmem [thread:$0]  %s2092_s12, 2048, %s1885_s23, [#allocation15], %s1675_s18, %s1675_s18, %s1676_s19  }
  0x8f   :  { %1659 = dma.done.wait [#allocation3], 384  }
  0x90   :  { %1660 = vsyncadd [#allocation3], 4294966912 }
  0x91   :  { %1661 = dma.done.wait [#allocation6], 2432  }
  0x92   :  { %1662 = vsyncadd [#allocation6], 4294964864 }
  0x93   :  { %1663 = dma.done.wait [#allocation9], 4096  }
  0x94   :  { %1664 = vsyncadd [#allocation9], 4294963200 }
  0x95   :  { %1665 = dma.done.wait [#allocation12], 4096  }
  0x96   :  { %1666 = vsyncadd [#allocation12], 4294963200 }
  0x97   :  { %1667 = dma.done.wait [#allocation15], 2048  }
  0x98   :  { %1668 = vsyncadd [#allocation15], 4294965248  ;;  %v1683_v0 = vmov 0.0|0.0   ;;  %vm1684_vm0 = vmmov 0   ;;  %v1685_v1 = vmov 0.0   ;;  %v164_v2 = vld [vmem:[#allocation7] sm:$0xff] }
  0x99   :  { %1251 = vmatprep.subr.bf16.mxu0 %v1683_v0  ;;  %1037 = vmatprep.mubr.msk.f32.mxu0 %vm1684_vm0, %v1685_v1  ;;  %v165_v3 = vld [vmem:[#allocation7 + $0x8] sm:$0xff]  ;;  %v166_v4 = vld [vmem:[#allocation7 + $0x10] sm:$0xff]  ;;  %v167_v6 = vld [vmem:[#allocation7 + $0x18] sm:$0xff]  ;;  %s1687_s1 = smov [#allocation16]  }
  0x9a   :  { %1275 = vmatprep.subr.bf16.mxu1 %v1683_v0  ;;  %1078 = vmatprep.mubr.msk.f32.mxu1 %vm1684_vm0, %v1685_v1  ;;  %v1252_v5 = vpack.c.bf16 %v165_v3, %v164_v2  ;;  %v1255_v7 = vpack.c.bf16 %v167_v6, %v166_v4  ;;  %v168_v8 = vld [vmem:[#allocation7 + $0x20] sm:$0xff]  ;;  %v169_v9 = vld [vmem:[#allocation7 + $0x28] sm:$0xff]  ;;  %v275_v14 = vld [vmem:[#allocation8 + $0x10] sm:$0xff]  ;;  %s838_s17 = sshll.u32 %s1687_s1, 4  ;;  %s2027_s17 = int_to_ptr.vmem [resolvable:$true] %s838_s17 }
  0x9b   :  { %v273_v10 = vld [vmem:[#allocation8] sm:$0xff]  ;;  %v274_v11 = vld [vmem:[#allocation8 + $0x8] sm:$0xff]  ;;  %v1258_v12 = vpack.c.bf16 %v169_v9, %v168_v8  ;;  %v276_v15 = vld [vmem:[#allocation8 + $0x18] sm:$0xff] }
  0x9c   :  { %1253 = vmatpush3.bf16.msra.mxu0 %v1252_v5  ;;  %v1276_v13 = vpack.c.bf16 %v274_v11, %v273_v10  ;;  %v170_v16 = vld [vmem:[#allocation7 + $0x30] sm:$0xff]  ;;  %v171_v17 = vld [vmem:[#allocation7 + $0x38] sm:$0xff]  ;;  %v1279_v18 = vpack.c.bf16 %v276_v15, %v275_v14  ;;  %v277_v19 = vld [vmem:[#allocation8 + $0x20] sm:$0xff] }
  0x9d   :  { %1254 = vmatprep.subr.bf16.mxu0 %v1683_v0  ;;  %v278_v20 = vld [vmem:[#allocation8 + $0x28] sm:$0xff]  ;;  %v1261_v21 = vpack.c.bf16 %v171_v17, %v170_v16  ;;  %v172_v22 = vld [vmem:[#allocation7 + $0x40] sm:$0xff]  ;;  %v279_v25 = vld [vmem:[#allocation8 + $0x30] sm:$0xff] }
  0x9e   :  { %1277 = vmatpush3.bf16.msra.mxu1 %v1276_v13  ;;  %v173_v23 = vld [vmem:[#allocation7 + $0x48] sm:$0xff]  ;;  %v1282_v24 = vpack.c.bf16 %v278_v20, %v277_v19  ;;  %v280_v26 = vld [vmem:[#allocation8 + $0x38] sm:$0xff]  ;;  %v174_v28 = vld [vmem:[#allocation7 + $0x50] sm:$0xff] }
  0x9f   :  { %1278 = vmatprep.subr.bf16.mxu1 %v1683_v0  ;;  %v1264_v27 = vpack.c.bf16 %v173_v23, %v172_v22  ;;  %v175_v29 = vld [vmem:[#allocation7 + $0x58] sm:$0xff]  ;;  %v1285_v30 = vpack.c.bf16 %v280_v26, %v279_v25  ;;  %v281_v31 = vld [vmem:[#allocation8 + $0x40] sm:$0xff]  ;;  %v282_v32 = vld [vmem:[#allocation8 + $0x48] sm:$0xff] }
  0xa0   :  { %1256 = vmatpush3.bf16.msra.mxu0 %v1255_v7  ;;  %v1267_v33 = vpack.c.bf16 %v175_v29, %v174_v28  ;;  %v176_v34 = vld [vmem:[#allocation7 + $0x60] sm:$0xff]  ;;  %v177_v35 = vld [vmem:[#allocation7 + $0x68] sm:$0xff]  ;;  %v1288_v36 = vpack.c.bf16 %v282_v32, %v281_v31  ;;  %v283_v37 = vld [vmem:[#allocation8 + $0x50] sm:$0xff] }
  0xa1   :  { %1257 = vmatprep.subr.bf16.mxu0 %v1683_v0  ;;  %v284_v38 = vld [vmem:[#allocation8 + $0x58] sm:$0xff]  ;;  %v1270_v39 = vpack.c.bf16 %v177_v35, %v176_v34  ;;  %v178_v40 = vld [vmem:[#allocation7 + $0x70] sm:$0xff]  ;;  %v163_v46 = vld [vmem:[#allocation2 + $0x10] sm:$0xff] }
  0xa2   :  { %1280 = vmatpush3.bf16.msra.mxu1 %v1279_v18  ;;  %v179_v41 = vld [vmem:[#allocation7 + $0x78] sm:$0xff]  ;;  %v1291_v42 = vpack.c.bf16 %v284_v38, %v283_v37  ;;  %v161_v44 = vld [vmem:[#allocation2] sm:$0xff]  ;;  %v285_v47 = vld [vmem:[#allocation8 + $0x60] sm:$0xff] }
  0xa3   :  { %1281 = vmatprep.subr.bf16.mxu1 %v1683_v0  ;;  %v1273_v43 = vpack.c.bf16 %v179_v41, %v178_v40  ;;  %v162_v45 = vld [vmem:[#allocation2 + $0x8] sm:$0xff]  ;;  %v286_v48 = vld [vmem:[#allocation8 + $0x68] sm:$0xff]  ;;  %v287_v50 = vld [vmem:[#allocation8 + $0x70] sm:$0xff] }
  0xa4   :  { %1259 = vmatpush3.bf16.msra.mxu0 %v1258_v12  ;;  %v1294_v49 = vpack.c.bf16 %v286_v48, %v285_v47  ;;  %v288_v51 = vld [vmem:[#allocation8 + $0x78] sm:$0xff]  ;;  %v382_v53 = vld [vmem:[#allocation10] sm:$0xff]  ;;  %v383_v54 = vld [vmem:[#allocation10 + $0x8] sm:$0xff] }
  0xa5   :  { %1260 = vmatprep.subr.bf16.mxu0 %v1683_v0  ;;  %v1297_v52 = vpack.c.bf16 %v288_v51, %v287_v50  ;;  %v384_v55 = vld [vmem:[#allocation10 + $0x10] sm:$0xff]  ;;  %v1300_v56 = vpack.c.bf16 %v383_v54, %v382_v53  ;;  %v385_v57 = vld [vmem:[#allocation10 + $0x18] sm:$0xff]  ;;  %v386_v59 = vld [vmem:[#allocation10 + $0x20] sm:$0xff] }
  0xa6   :  { %1283 = vmatpush3.bf16.msra.mxu1 %v1282_v24  ;;  %v1303_v58 = vpack.c.bf16 %v385_v57, %v384_v55  ;;  %v387_v60 = vld [vmem:[#allocation10 + $0x28] sm:$0xff]  ;;  %v388_v62 = vld [vmem:[#allocation10 + $0x30] sm:$0xff]  ;;  %v389_v63 = vld [vmem:[#allocation10 + $0x38] sm:$0xff] }
  0xa7   :  { %1284 = vmatprep.subr.bf16.mxu1 %v1683_v0  ;;  %v1306_v61 = vpack.c.bf16 %v387_v60, %v386_v59  ;;  %v1309_v2 = vpack.c.bf16 %v389_v63, %v388_v62  ;;  %v390_v3 = vld [vmem:[#allocation10 + $0x40] sm:$0xff]  ;;  %v391_v4 = vld [vmem:[#allocation10 + $0x48] sm:$0xff]  ;;  %v392_v6 = vld [vmem:[#allocation10 + $0x50] sm:$0xff] }
  0xa8   :  { %1262 = vmatpush3.bf16.msra.mxu0 %v1261_v21  ;;  %v1312_v5 = vpack.c.bf16 %v391_v4, %v390_v3  ;;  %v393_v7 = vld [vmem:[#allocation10 + $0x58] sm:$0xff]  ;;  %v885_v9 = vld [vmem:[%s2083_s3] ss:$0 sm:$0xff]  ;;  %v394_v25 = vld [vmem:[#allocation10 + $0x60] sm:$0xff] }
  0xa9   :  { %1263 = vmatprep.subr.bf16.mxu0 %v1683_v0  ;;  %v1315_v8 = vpack.c.bf16 %v393_v7, %v392_v6  ;;  %v395_v26 = vld [vmem:[#allocation10 + $0x68] sm:$0xff]  ;;  %v396_v28 = vld [vmem:[#allocation10 + $0x70] sm:$0xff]  ;;  %v397_v29 = vld [vmem:[#allocation10 + $0x78] sm:$0xff] }
  0xaa   :  { %1286 = vmatpush3.bf16.msra.mxu1 %v1285_v30  ;;  %v1321_v30 = vpack.c.bf16 %v397_v29, %v396_v28  ;;  %v491_v31 = vld [vmem:[#allocation11] sm:$0xff]  ;;  %v492_v32 = vld [vmem:[#allocation11 + $0x8] sm:$0xff]  ;;  %v494_v35 = vld [vmem:[#allocation11 + $0x18] sm:$0xff] }
  0xab   :  { %1287 = vmatprep.subr.bf16.mxu1 %v1683_v0  ;;  %v1324_v34 = vpack.c.bf16 %v492_v32, %v491_v31  ;;  %v495_v37 = vld [vmem:[#allocation11 + $0x20] sm:$0xff]  ;;  %v496_v38 = vld [vmem:[#allocation11 + $0x28] sm:$0xff]  ;;  %v497_v40 = vld [vmem:[#allocation11 + $0x30] sm:$0xff] }
  0xac   :  { %1265 = vmatpush3.bf16.msra.mxu0 %v1264_v27  ;;  %v1318_v27 = vpack.c.bf16 %v395_v26, %v394_v25  ;;  %v498_v41 = vld [vmem:[#allocation11 + $0x38] sm:$0xff]  ;;  %v503_v3 = vld [vmem:[#allocation11 + $0x60] sm:$0xff]  ;;  %v504_v4 = vld [vmem:[#allocation11 + $0x68] sm:$0xff] }
  0xad   :  { %1266 = vmatprep.subr.bf16.mxu0 %v1683_v0  ;;  %v502_v47 = vld [vmem:[#allocation11 + $0x58] sm:$0xff]  ;;  %v505_v6 = vld [vmem:[#allocation11 + $0x70] sm:$0xff]  ;;  %v703_v31 = vld [vmem:[#allocation14] sm:$0xff] }
  0xae   :  { %1289 = vmatpush3.bf16.msra.mxu1 %v1288_v36  ;;  %v506_v7 = vld [vmem:[#allocation11 + $0x78] sm:$0xff]  ;;  %v704_v32 = vld [vmem:[#allocation14 + $0x8] sm:$0xff] }
  0xaf   :  { %1290 = vmatprep.subr.bf16.mxu1 %v1683_v0  ;;  %v611_v25 = vld [vmem:[#allocation13 + $0x58] sm:$0xff] }
  0xb0   :  { %1268 = vmatpush3.bf16.msra.mxu0 %v1267_v33  ;;  %v493_v33 = vld [vmem:[#allocation11 + $0x10] sm:$0xff] }
  0xb1   :  { %1269 = vmatprep.subr.bf16.mxu0 %v1683_v0  ;;  %v1327_v36 = vpack.c.bf16 %v494_v35, %v493_v33  ;;  %v1372_v35 = vpack.c.bf16 %v704_v32, %v703_v31 }
  0xb2   :  { %1292 = vmatpush3.bf16.msra.mxu1 %v1291_v42  ;;  %v1333_v42 = vpack.c.bf16 %v498_v41, %v497_v40  ;;  %v706_v40 = vld [vmem:[#allocation14 + $0x18] sm:$0xff] }
  0xb3   :  { %1293 = vmatprep.subr.bf16.mxu1 %v1683_v0 }
  0xb4   :  { %1271 = vmatpush3.bf16.msra.mxu0 %v1270_v39  ;;  %v1330_v39 = vpack.c.bf16 %v496_v38, %v495_v37 }
  0xb5   :  { %1272 = vmatprep.subr.bf16.mxu0 %v1683_v0 }
  0xb6   :  { %1295 = vmatpush3.bf16.msra.mxu1 %v1294_v49  ;;  %v886_v49 = vld [vmem:[%s2085_s5] ss:$0 sm:$0xff] }
  0xb7   :  { %1296 = vmatprep.subr.bf16.mxu1 %v1683_v0 }
  0xb8   :  { %1274 = vmatpush3.bf16.msra.mxu0 %v1273_v43  ;;  %v499_v43 = vld [vmem:[#allocation11 + $0x40] sm:$0xff] }
  0xb9   :  { %1299 = vmatprep.subr.bf16.mxu0 %v1683_v0 }
  0xba   :  { %1298 = vmatpush3.bf16.msra.mxu1 %v1297_v52 }
  0xbb   :  { %1038 = vmatmul.mubr.f32.vlgmr.msra.gmra.mrb[0].mxu0 %v161_v44  ;;  %1323 = vmatprep.subr.bf16.mxu1 %v1683_v0  ;;  %v500_v44 = vld [vmem:[#allocation11 + $0x48] sm:$0xff] }
  0xbc   :  { %1040 = vmatprep.mubr.msk.f32.mxu0 %vm1684_vm0, %v1685_v1  ;;  %1301 = vmatpush3.bf16.msra.mxu0 %v1300_v56 }
  0xbd   :  { %1302 = vmatprep.subr.bf16.mxu0 %v1683_v0 }
  0xbf   :  { %1041 = vmatmul.mubr.f32.gmra.mrb[2].mxu0 %v162_v45  ;;  %v1336_v45 = vpack.c.bf16 %v500_v44, %v499_v43 }
  0xc0   :  { %1043 = vmatprep.mubr.msk.f32.mxu0 %vm1684_vm0, %v1685_v1  ;;  %1304 = vmatpush3.bf16.msra.mxu0 %v1303_v58 }
  0xc1   :  { %1305 = vmatprep.subr.bf16.mxu0 %v1683_v0 }
  0xc3   :  { %1044 = vmatmul.mubr.f32.gmra.mrb[4].mxu0 %v163_v46  ;;  %v501_v46 = vld [vmem:[#allocation11 + $0x50] sm:$0xff] }
  0xc4   :  { %1119 = vmatprep.mubr.msk.f32.mxu0 %vm1684_vm0, %v1685_v1  ;;  %1307 = vmatpush3.bf16.msra.mxu0 %v1306_v61  ;;  %v1339_v48 = vpack.c.bf16 %v502_v47, %v501_v46  ;;  %v707_v47 = vld [vmem:[#allocation14 + $0x20] sm:$0xff] }
  0xc5   :  { %1308 = vmatprep.subr.bf16.mxu0 %v1683_v0 }
  0xc8   :  { %1310 = vmatpush3.bf16.msra.mxu0 %v1309_v2 }
  0xc9   :  { %1311 = vmatprep.subr.bf16.mxu0 %v1683_v0 }
  0xcc   :  { %1313 = vmatpush3.bf16.msra.mxu0 %v1312_v5  ;;  %v1342_v5 = vpack.c.bf16 %v504_v4, %v503_v3  ;;  %v716_v3 = vld [vmem:[#allocation14 + $0x68] sm:$0xff] }
  0xcd   :  { %1314 = vmatprep.subr.bf16.mxu0 %v1683_v0 }
  0xd0   :  { %1316 = vmatpush3.bf16.msra.mxu0 %v1315_v8  ;;  %v1345_v8 = vpack.c.bf16 %v506_v7, %v505_v6  ;;  %v615_v6 = vld [vmem:[#allocation13 + $0x78] sm:$0xff]  ;;  %v717_v7 = vld [vmem:[#allocation14 + $0x70] sm:$0xff] }
  0xd1   :  { %1317 = vmatprep.subr.bf16.mxu0 %v1683_v0 }
  0xd4   :  { %1319 = vmatpush3.bf16.msra.mxu0 %v1318_v27  ;;  %v887_v27 = vld [vmem:[%s2087_s7] ss:$0 sm:$0xff] }
  0xd5   :  { %1320 = vmatprep.subr.bf16.mxu0 %v1683_v0 }
  0xd8   :  { %1322 = vmatpush3.bf16.msra.mxu0 %v1321_v30 }
  0xd9   :  { %1347 = vmatprep.subr.bf16.mxu0 %v1683_v0 }
 0x18e   :  { %v253_v10 = vpop.f32.mrb[0].mxu0 }
 0x18f   :  { %v254_v11 = vadd.f32 %v885_v9, %v253_v10  ;;  %v1039_v12 = vpop.f32.mrb[1].mxu0  ;;  %v601_v10 = vld [vmem:[#allocation13 + $0x8] sm:$0xff] }
 0x190   :  { %v602_v12 = vld [vmem:[#allocation13 + $0x10] sm:$0xff] }
 0x191   :  { %v267_v13 = vmul.f32 0.2, %v254_v11 }
 0x192   :  { %v258_v14 = vpop.f32.mrb[2].mxu0 }
 0x193   :  { %v270_v15 = vmax.f32 %v254_v11, %v267_v13  ;;  %v259_v16 = vadd.f32 %v885_v9, %v258_v14  ;;  %v1042_v17 = vpop.f32.mrb[3].mxu0  ;;  %v603_v13 = vld [vmem:[#allocation13 + $0x18] sm:$0xff] }
 0x194   :  { %v1351_v14 = vpack.c.bf16 %v603_v13, %v602_v12 }
 0x195   :  { %v268_v18 = vmul.f32 0.2, %v259_v16  ;;  %1079 = vmatmul.mubr.f32.vlgmr.msra.gmra.mrb[0].mxu1 %v270_v15  ;;  %v604_v15 = vld [vmem:[#allocation13 + $0x20] sm:$0xff] }
 0x196   :  { %v263_v19 = vpop.f32.mrb[4].mxu0  ;;  %1081 = vmatprep.mubr.msk.f32.mxu1 %vm1684_vm0, %v1685_v1  ;;  %1325 = vmatpush3.bf16.msra.mxu1 %v1324_v34 }
 0x197   :  { %v271_v20 = vmax.f32 %v259_v16, %v268_v18  ;;  %v264_v21 = vadd.f32 %v885_v9, %v263_v19  ;;  %v1045_v22 = vpop.f32.mrb[5].mxu0  ;;  %1326 = vmatprep.subr.bf16.mxu1 %v1683_v0  ;;  %v600_v9 = vld [vmem:[#allocation13] sm:$0xff]  ;;  %v605_v16 = vld [vmem:[#allocation13 + $0x28] sm:$0xff]  ;;  %v606_v18 = vld [vmem:[#allocation13 + $0x30] sm:$0xff] }
 0x198   :  { %v1348_v11 = vpack.c.bf16 %v601_v10, %v600_v9  ;;  %v1354_v17 = vpack.c.bf16 %v605_v16, %v604_v15  ;;  %v607_v19 = vld [vmem:[#allocation13 + $0x38] sm:$0xff]  ;;  %v609_v22 = vld [vmem:[#allocation13 + $0x48] sm:$0xff] }
 0x199   :  { %v269_v23 = vmul.f32 0.2, %v264_v21  ;;  %1082 = vmatmul.mubr.f32.gmra.mrb[2].mxu1 %v271_v20  ;;  %v1357_v20 = vpack.c.bf16 %v607_v19, %v606_v18  ;;  %v718_v9 = vld [vmem:[#allocation14 + $0x78] sm:$0xff] }
 0x19a   :  { %1084 = vmatprep.mubr.msk.f32.mxu1 %vm1684_vm0, %v1685_v1  ;;  %1328 = vmatpush3.bf16.msra.mxu1 %v1327_v36  ;;  %v1393_v10 = vpack.c.bf16 %v718_v9, %v717_v7 }
 0x19b   :  { %v272_v24 = vmax.f32 %v264_v21, %v269_v23  ;;  %1329 = vmatprep.subr.bf16.mxu1 %v1683_v0  ;;  %v608_v21 = vld [vmem:[#allocation13 + $0x40] sm:$0xff] }
 0x19c   :  { %v1360_v23 = vpack.c.bf16 %v609_v22, %v608_v21 }
 0x19d   :  { %1085 = vmatmul.mubr.f32.gmra.mrb[4].mxu1 %v272_v24  ;;  %v610_v24 = vld [vmem:[#allocation13 + $0x50] sm:$0xff] }
 0x19e   :  { %1160 = vmatprep.mubr.msk.f32.mxu1 %vm1684_vm0, %v1685_v1  ;;  %1331 = vmatpush3.bf16.msra.mxu1 %v1330_v39  ;;  %v1363_v26 = vpack.c.bf16 %v611_v25, %v610_v24  ;;  %v705_v39 = vld [vmem:[#allocation14 + $0x10] sm:$0xff] }
 0x19f   :  { %1332 = vmatprep.subr.bf16.mxu1 %v1683_v0  ;;  %v1375_v43 = vpack.c.bf16 %v706_v40, %v705_v39 }
 0x1a2   :  { %1334 = vmatpush3.bf16.msra.mxu1 %v1333_v42 }
 0x1a3   :  { %1335 = vmatprep.subr.bf16.mxu1 %v1683_v0 }
 0x1a6   :  { %1337 = vmatpush3.bf16.msra.mxu1 %v1336_v45 }
 0x1a7   :  { %1338 = vmatprep.subr.bf16.mxu1 %v1683_v0 }
 0x1aa   :  { %1340 = vmatpush3.bf16.msra.mxu1 %v1339_v48  ;;  %v708_v48 = vld [vmem:[#allocation14 + $0x28] sm:$0xff] }
 0x1ab   :  { %1341 = vmatprep.subr.bf16.mxu1 %v1683_v0 }
 0x1ae   :  { %1343 = vmatpush3.bf16.msra.mxu1 %v1342_v5  ;;  %v614_v5 = vld [vmem:[#allocation13 + $0x70] sm:$0xff] }
 0x1af   :  { %1344 = vmatprep.subr.bf16.mxu1 %v1683_v0 }
 0x1b2   :  { %1346 = vmatpush3.bf16.msra.mxu1 %v1345_v8  ;;  %v1369_v8 = vpack.c.bf16 %v615_v6, %v614_v5 }
 0x1b3   :  { %1371 = vmatprep.subr.bf16.mxu1 %v1683_v0 }
 0x268   :  { %v362_v50 = vpop.f32.mrb[0].mxu1 }
 0x269   :  { %v363_v51 = vadd.f32 %v886_v49, %v362_v50  ;;  %v1080_v52 = vpop.f32.mrb[1].mxu1  ;;  %v1378_v50 = vpack.c.bf16 %v708_v48, %v707_v47 }
 0x26a   :  { %v709_v52 = vld [vmem:[#allocation14 + $0x30] sm:$0xff] }
 0x26b   :  { %v376_v53 = vmul.f32 0.2, %v363_v51 }
 0x26c   :  { %v367_v54 = vpop.f32.mrb[2].mxu1 }
 0x26d   :  { %v379_v55 = vmax.f32 %v363_v51, %v376_v53  ;;  %v368_v56 = vadd.f32 %v886_v49, %v367_v54  ;;  %v1083_v57 = vpop.f32.mrb[3].mxu1  ;;  %v710_v53 = vld [vmem:[#allocation14 + $0x38] sm:$0xff] }
 0x26e   :  { %v1381_v54 = vpack.c.bf16 %v710_v53, %v709_v52 }
 0x26f   :  { %v377_v58 = vmul.f32 0.2, %v368_v56  ;;  %1120 = vmatmul.mubr.f32.vlgmr.msra.gmra.mrb[6].mxu0 %v379_v55  ;;  %v711_v55 = vld [vmem:[#allocation14 + $0x40] sm:$0xff] }
 0x270   :  { %v372_v59 = vpop.f32.mrb[4].mxu1  ;;  %1122 = vmatprep.mubr.msk.f32.mxu0 %vm1684_vm0, %v1685_v1  ;;  %1349 = vmatpush3.bf16.msra.mxu0 %v1348_v11  ;;  %v888_v11 = vld [vmem:[%s2089_s9] ss:$0 sm:$0xff] }
 0x271   :  { %v380_v60 = vmax.f32 %v368_v56, %v377_v58  ;;  %v373_v61 = vadd.f32 %v886_v49, %v372_v59  ;;  %v1086_v62 = vpop.f32.mrb[5].mxu1  ;;  %1350 = vmatprep.subr.bf16.mxu0 %v1683_v0  ;;  %v712_v56 = vld [vmem:[#allocation14 + $0x48] sm:$0xff]  ;;  %v713_v58 = vld [vmem:[#allocation14 + $0x50] sm:$0xff]  ;;  %v714_v59 = vld [vmem:[#allocation14 + $0x58] sm:$0xff] }
 0x272   :  { %v1384_v57 = vpack.c.bf16 %v712_v56, %v711_v55  ;;  %v613_v62 = vld [vmem:[#allocation13 + $0x68] sm:$0xff] }
 0x273   :  { %v378_v63 = vmul.f32 0.2, %v373_v61  ;;  %1123 = vmatmul.mubr.f32.gmra.mrb[8].mxu0 %v380_v60  ;;  %v1387_v60 = vpack.c.bf16 %v714_v59, %v713_v58 }
 0x274   :  { %1125 = vmatprep.mubr.msk.f32.mxu0 %vm1684_vm0, %v1685_v1  ;;  %1352 = vmatpush3.bf16.msra.mxu0 %v1351_v14 }
 0x275   :  { %v381_v2 = vmax.f32 %v373_v61, %v378_v63  ;;  %1353 = vmatprep.subr.bf16.mxu0 %v1683_v0  ;;  %v612_v61 = vld [vmem:[#allocation13 + $0x60] sm:$0xff] }
 0x276   :  { %v715_v63 = vld [vmem:[#allocation14 + $0x60] sm:$0xff] }
 0x277   :  { %1126 = vmatmul.mubr.f32.gmra.mrb[10].mxu0 %v381_v2  ;;  %v1366_v2 = vpack.c.bf16 %v613_v62, %v612_v61  ;;  %v1390_v4 = vpack.c.bf16 %v716_v3, %v715_v63 }
 0x278   :  { %1201 = vmatprep.mubr.msk.f32.mxu0 %vm1684_vm0, %v1685_v1  ;;  %1355 = vmatpush3.bf16.msra.mxu0 %v1354_v17 }
 0x279   :  { %1356 = vmatprep.subr.bf16.mxu0 %v1683_v0 }
 0x27c   :  { %1358 = vmatpush3.bf16.msra.mxu0 %v1357_v20 }
 0x27d   :  { %1359 = vmatprep.subr.bf16.mxu0 %v1683_v0 }
 0x280   :  { %1361 = vmatpush3.bf16.msra.mxu0 %v1360_v23 }
 0x281   :  { %1362 = vmatprep.subr.bf16.mxu0 %v1683_v0 }
 0x284   :  { %1364 = vmatpush3.bf16.msra.mxu0 %v1363_v26  ;;  %v889_v26 = vld [vmem:[%s2091_s11] ss:$0 sm:$0xff]  ;;  %s1686_s11 = smov [#allocation17]  }
 0x285   :  { %1365 = vmatprep.subr.bf16.mxu0 %v1683_v0 }
 0x288   :  { %1367 = vmatpush3.bf16.msra.mxu0 %v1366_v2 }
 0x289   :  { %1368 = vmatprep.subr.bf16.mxu0 %v1683_v0 }
 0x28c   :  { %1370 = vmatpush3.bf16.msra.mxu0 %v1369_v8 }
 0x342   :  { %v471_v28 = vpop.f32.mrb[6].mxu0 }
 0x343   :  { %v472_v29 = vadd.f32 %v887_v27, %v471_v28  ;;  %v1121_v30 = vpop.f32.mrb[7].mxu0 }
 0x345   :  { %v485_v33 = vmul.f32 0.2, %v472_v29 }
 0x346   :  { %v476_v34 = vpop.f32.mrb[8].mxu0 }
 0x347   :  { %v488_v36 = vmax.f32 %v472_v29, %v485_v33  ;;  %v477_v37 = vadd.f32 %v887_v27, %v476_v34  ;;  %v1124_v38 = vpop.f32.mrb[9].mxu0 }
 0x349   :  { %v486_v41 = vmul.f32 0.2, %v477_v37  ;;  %1161 = vmatmul.mubr.f32.vlgmr.msra.gmra.mrb[6].mxu1 %v488_v36 }
 0x34a   :  { %v481_v42 = vpop.f32.mrb[10].mxu0  ;;  %1163 = vmatprep.mubr.msk.f32.mxu1 %vm1684_vm0, %v1685_v1  ;;  %1373 = vmatpush3.bf16.msra.mxu1 %v1372_v35 }
 0x34b   :  { %v489_v44 = vmax.f32 %v477_v37, %v486_v41  ;;  %v482_v45 = vadd.f32 %v887_v27, %v481_v42  ;;  %v1127_v46 = vpop.f32.mrb[11].mxu0  ;;  %1374 = vmatprep.subr.bf16.mxu1 %v1683_v0  ;;  %v890_v27 = vld [vmem:[%s2093_s13] ss:$0 sm:$0xff]  ;;  %s850_s13 = sshll.u32 %s1686_s11, 4  ;;  %s851_s13 = int_to_ptr.vmem [resolvable:$true] %s850_s13 }
 0x34c   :  { %s1593_s25 = scalar_lea.vmem %s851_s13, 384  ;;  %p1598_p9 = scmp.lt.s32.totalorder %s851_s13, %s851_s13 }
 0x34d   :  { %v487_v49 = vmul.f32 0.2, %v482_v45  ;;  %1164 = vmatmul.mubr.f32.gmra.mrb[8].mxu1 %v489_v44  ;;  %p1594_p8 = scmp.ne.s32.totalorder %s851_s13, %s1593_s25  ;;  %p1599_p10 = scmp.lt.s32.totalorder %s1593_s25, %s1593_s25 }
 0x34e   :  { %1166 = vmatprep.mubr.msk.f32.mxu1 %vm1684_vm0, %v1685_v1  ;;  %1376 = vmatpush3.bf16.msra.mxu1 %v1375_v43 }
 0x34f   :  { %v490_v51 = vmax.f32 %v482_v45, %v487_v49  ;;  %1377 = vmatprep.subr.bf16.mxu1 %v1683_v0  ;;  %p1600_p11 = por %p1599_p10, %p1598_p9 }
 0x351   :  { %1167 = vmatmul.mubr.f32.gmra.mrb[10].mxu1 %v490_v51  ;;  %p1601_p12 = pnand %p1600_p11, %p1594_p8 }
 0x352   :  { %1379 = vmatpush3.bf16.msra.mxu1 %v1378_v50  ;;  %1242 = vmatprep.mubr.msk.f32.mxu1 %vm1684_vm0, %v1685_v1 }
 0x353   :  { %1380 = vmatprep.subr.bf16.mxu1 %v1683_v0 }
 0x356   :  { %1382 = vmatpush3.bf16.msra.mxu1 %v1381_v54 }
 0x357   :  { %1383 = vmatprep.subr.bf16.mxu1 %v1683_v0 }
 0x35a   :  { %1385 = vmatpush3.bf16.msra.mxu1 %v1384_v57 }
 0x35b   :  { %1386 = vmatprep.subr.bf16.mxu1 %v1683_v0 }
 0x35e   :  { %1388 = vmatpush3.bf16.msra.mxu1 %v1387_v60 }
 0x35f   :  { %1389 = vmatprep.subr.bf16.mxu1 %v1683_v0 }
 0x362   :  { %1391 = vmatpush3.bf16.msra.mxu1 %v1390_v4 }
 0x363   :  { %1392 = vmatprep.subr.bf16.mxu1 %v1683_v0 }
 0x366   :  { %1394 = vmatpush3.bf16.msra.mxu1 %v1393_v10 }
 0x41c   :  { %v580_v12 = vpop.f32.mrb[6].mxu1 }
 0x41d   :  { %v581_v13 = vadd.f32 %v888_v11, %v580_v12  ;;  %v1162_v14 = vpop.f32.mrb[7].mxu1 }
 0x41f   :  { %v594_v15 = vmul.f32 0.2, %v581_v13 }
 0x420   :  { %v585_v16 = vpop.f32.mrb[8].mxu1 }
 0x421   :  { %v597_v17 = vmax.f32 %v581_v13, %v594_v15  ;;  %v586_v18 = vadd.f32 %v888_v11, %v585_v16  ;;  %v1165_v19 = vpop.f32.mrb[9].mxu1 }
 0x423   :  { %v595_v20 = vmul.f32 0.2, %v586_v18  ;;  %1202 = vmatmul.mubr.f32.vlgmr.msra.gmra.mrb[12].mxu0 %v597_v17  ;;  %1243 = vmatmul.mubr.f32.vlgmr.msra.gmra.mrb[12].mxu1 %v597_v17 }
 0x424   :  { %v590_v0 = vpop.f32.mrb[10].mxu1  ;;  %1204 = vmatprep.mubr.msk.f32.mxu0 %vm1684_vm0, %v1685_v1  ;;  %1245 = vmatprep.mubr.msk.f32.mxu1 %vm1684_vm0, %v1685_v1 }
 0x425   :  { %v598_v21 = vmax.f32 %v586_v18, %v595_v20  ;;  %v591_v22 = vadd.f32 %v888_v11, %v590_v0  ;;  %v1168_v23 = vpop.f32.mrb[11].mxu1 }
 0x427   :  { %v596_v24 = vmul.f32 0.2, %v591_v22  ;;  %1205 = vmatmul.mubr.f32.gmra.mrb[14].mxu0 %v598_v21  ;;  %1246 = vmatmul.mubr.f32.gmra.mrb[14].mxu1 %v598_v21 }
 0x428   :  { %1207 = vmatprep.mubr.msk.f32.mxu0 %vm1684_vm0, %v1685_v1  ;;  %1248 = vmatprep.mubr.msk.f32.mxu1 %vm1684_vm0, %v1685_v1 }
 0x429   :  { %v599_v25 = vmax.f32 %v591_v22, %v596_v24 }
 0x42b   :  { %1208 = vmatmul.mubr.f32.gmra.mrb[16].mxu0 %v599_v25  ;;  %1249 = vmatmul.mubr.f32.gmra.mrb[16].mxu1 %v599_v25 }
 0x4f6   :  { %v689_v28 = vpop.f32.mrb[12].mxu0  ;;  %v792_v29 = vpop.f32.mrb[12].mxu1 }
 0x4f7   :  { %v2024_v30 = vadd.f32 %v889_v26, %v689_v28  ;;  %v793_v31 = vadd.f32 %v890_v27, %v792_v29  ;;  %v1203_v32 = vpop.f32.mrb[13].mxu0  ;;  %v1244_v33 = vpop.f32.mrb[13].mxu1 }
 0x4f9   :  { %824 = vst [vmem:[#allocation16] sm:$0xff] %v2024_v30  ;;  %v806_v1 = vmul.f32 0.5, %v793_v31  ;;  %827 = vst [vmem:[#allocation17] sm:$0xff] %v793_v31 }
 0x4fa   :  { %v694_v34 = vpop.f32.mrb[14].mxu0  ;;  %v797_v35 = vpop.f32.mrb[14].mxu1 }
 0x4fb   :  { %v809_v36 = vmul.f32 1.442695, %v806_v1  ;;  %v695_v37 = vadd.f32 %v889_v26, %v694_v34  ;;  %v798_v38 = vadd.f32 %v890_v27, %v797_v35  ;;  %v1206_v39 = vpop.f32.mrb[15].mxu0  ;;  %v1247_v40 = vpop.f32.mrb[15].mxu1 }
 0x4fd   :  { %1411 = vpow2.f32 %v809_v36  ;;  %825 = vst [vmem:[#allocation16 + $0x8] sm:$0xff] %v695_v37  ;;  %v807_v41 = vmul.f32 0.5, %v798_v38  ;;  %828 = vst [vmem:[#allocation17 + $0x8] sm:$0xff] %v798_v38 }
 0x4fe   :  { %v699_v42 = vpop.f32.mrb[16].mxu0  ;;  %v802_v43 = vpop.f32.mrb[16].mxu1 }
 0x4ff   :  { %v811_v44 = vmul.f32 1.442695, %v807_v41  ;;  %v700_v45 = vadd.f32 %v889_v26, %v699_v42  ;;  %v803_v46 = vadd.f32 %v890_v27, %v802_v43  ;;  %v1209_v47 = vpop.f32.mrb[17].mxu0  ;;  %v1250_v48 = vpop.f32.mrb[17].mxu1 }
 0x501   :  { %1413 = vpow2.f32 %v811_v44  ;;  %826 = vst [vmem:[#allocation16 + $0x10] sm:$0xff] %v700_v45  ;;  %v808_v49 = vmul.f32 0.5, %v803_v46  ;;  %829 = vst [vmem:[#allocation17 + $0x10] sm:$0xff] %v803_v46 }
 0x502   :  { %1604 = shalt.err (!%p1601_p12)
}
 0x503   :  { %s1605_s4 = scalar_lea.hbm %s2095_s15, 384 }
 0x504   :  { %p1606_p13 = scmp.ne.s32.totalorder %s2095_s15, %s1605_s4  ;;  %p1609_p0 = scmp.lt.u32.totalorder %s1605_s4, %s2095_s15 }
 0x506   :  { %p1611_p1 = pnand %p1609_p0, %p1606_p13 }
 0x508   :  { %1614 = shalt.err (!%p1611_p1)
}
 0x509   :  { %856 = dma.vmem_to_hbm [thread:$0]  %s851_s13, 384, %s2095_s15, [#allocation18], %s1675_s18, %s1675_s18, %s1676_s19   ;;  %v813_v50 = vmul.f32 1.442695, %v808_v49 }
 0x50a   :  { %s1615_s12 = scalar_lea.vmem %s2027_s17, 384  ;;  %p1620_p3 = scmp.lt.s32.totalorder %s2027_s17, %s2027_s17 }
 0x50b   :  { %p1616_p2 = scmp.ne.s32.totalorder %s2027_s17, %s1615_s12  ;;  %p1621_p4 = scmp.lt.s32.totalorder %s1615_s12, %s1615_s12 }
 0x50d   :  { %p1622_p5 = por %p1621_p4, %p1620_p3 }
 0x50f   :  { %p1623_p6 = pnand %p1622_p5, %p1616_p2 }
 0x511   :  { %1626 = shalt.err (!%p1623_p6)
}
 0x512   :  { %s1627_s8 = scalar_lea.hbm %s2094_s14, 384 }
 0x513   :  { %p1628_p7 = scmp.ne.s32.totalorder %s2094_s14, %s1627_s8  ;;  %p1631_p8 = scmp.lt.u32.totalorder %s1627_s8, %s2094_s14 }
 0x515   :  { %p1633_p9 = pnand %p1631_p8, %p1628_p7 }
 0x517   :  { %1636 = shalt.err (!%p1633_p9)
}
 0x518   :  { %844 = dma.vmem_to_hbm [thread:$0]  %s2027_s17, 384, %s2094_s14, [#allocation4], %s1675_s18, %s1675_s18, %s1676_s19   ;;  %1415 = vpow2.f32 %v813_v50  ;;  %v815_v51 = vld [vmem:[#allocation5] sm:$0xff]  ;;  %v1412_v52 = vpop.eup %1411  ;;  %v816_v54 = vld [vmem:[#allocation5 + $0x8] sm:$0xff]  ;;  %v817_v58 = vld [vmem:[#allocation5 + $0x10] sm:$0xff] }
 0x519   :  { %v818_v53 = vmul.f32 %v1412_v52, %v815_v51  ;;  %v1414_v56 = vpop.eup %1413  ;;  %s1688_s24 = smov [#allocation19]  }
 0x51a   :  { %v819_v57 = vmul.f32 %v1414_v56, %v816_v54  ;;  %s862_s22 = sshll.u32 %s1688_s24, 4  ;;  %s863_s22 = int_to_ptr.vmem [resolvable:$true] %s862_s22 }
 0x51b   :  { %v821_v55 = vadd.f32 %v818_v53, %v2024_v30  ;;  %s1637_s14 = scalar_lea.vmem %s863_s22, 384  ;;  %p1642_p11 = scmp.lt.s32.totalorder %s863_s22, %s863_s22 }
 0x51c   :  { %v822_v59 = vadd.f32 %v819_v57, %v695_v37  ;;  %p1638_p10 = scmp.ne.s32.totalorder %s863_s22, %s1637_s14  ;;  %p1643_p12 = scmp.lt.s32.totalorder %s1637_s14, %s1637_s14 }
 0x51d   :  { %830 = vst [vmem:[#allocation19] sm:$0xff] %v821_v55 }
 0x51e   :  { %831 = vst [vmem:[#allocation19 + $0x8] sm:$0xff] %v822_v59  ;;  %p1644_p13 = por %p1643_p12, %p1642_p11 }
 0x520   :  { %p1645_p0 = pnand %p1644_p13, %p1638_p10 }
 0x522   :  { %v1416_v60 = vpop.eup %1415 }
 0x523   :  { %v820_v61 = vmul.f32 %v1416_v60, %v817_v58 }
 0x525   :  { %v823_v62 = vadd.f32 %v820_v61, %v700_v45 }
 0x527   :  { %832 = vst [vmem:[#allocation19 + $0x10] sm:$0xff] %v823_v62 }
 0x528   :  { %1648 = shalt.err (!%p1645_p0)
}
 0x529   :  { %s1649_s13 = scalar_lea.hbm %s2096_s16, 384 }
 0x52a   :  { %p1650_p1 = scmp.ne.s32.totalorder %s2096_s16, %s1649_s13  ;;  %p1653_p2 = scmp.lt.u32.totalorder %s1649_s13, %s2096_s16 }
 0x52c   :  { %p1655_p3 = pnand %p1653_p2, %p1650_p1 }
 0x52e   :  { %1658 = shalt.err (!%p1655_p3)
}
 0x52f   :  { %868 = dma.vmem_to_hbm [thread:$0]  %s863_s22, 384, %s2096_s16, [#allocation18], %s1675_s18, %s1675_s18, %s1676_s19  }
 0x530   :  { %1669 = dma.done.wait [#allocation4], 384  }
 0x531   :  { %1670 = vsyncadd [#allocation4], 4294966912 }
 0x532   :  { %1671 = dma.done.wait [#allocation18], 768  }
 0x533   :  { %1672 = vsyncadd [#allocation18], 4294966528 }
 0x534   :  { %878 = vsyncpa [#allocation3], 1 }
 0x535   :  { %879 = vsyncpa [#allocation6], 1 }
 0x536   :  { %880 = vsyncpa [#allocation9], 1 }
 0x537   :  { %881 = vsyncpa [#allocation12], 1 }
 0x538   :  { %882 = vsyncpa [#allocation15], 1 }
 0x539   :  { %883 = vsyncpa [#allocation4], 1 }
 0x53a   :  { %884 = vsyncpa [#allocation18], 1 }

</bundles_post_ra>
